<compile_context>
chip_gen: v7x
topology: tpu7x:2x2x1
jax: 0.10.0
libtpu: 0.0.40
codegen_flags: <defaults>
</compile_context>

<pallas_src>
import jax
import jax.numpy as jnp
from jax.experimental import pallas as pl
from jax.experimental.pallas import tpu as pltpu

_WIDTH_CANDIDATES = (4096, 2048, 1024, 512, 256, 128)
_TARGET_BLOCK_BYTES = 2 * 1024 * 1024  # ~2 MiB per block.


def _identity_kernel(x_ref, o_ref):
    o_ref[...] = x_ref[...]


def _round_up(a, b):
    return ((a + b - 1) // b) * b


def identity_pallas(x):
    """Pass `x` through a tiled, lane-dense, input-aliased Pallas copy kernel."""
    n = x.size
    if n == 0:
        return x  # zero-sized array: nothing to copy (avoids 0-division at trace time)

    itemsize = max(1, jnp.dtype(x.dtype).itemsize)
    sub = max(8, 32 // itemsize)  # sublane multiple for this dtype (8 f32, 16 bf16, 32 i8)

    # Pick the widest lane-dense last dim that divides n, preferring >= `sub` rows so
    # vregs are fully populated along the sublane axis.
    width = None
    for cand in _WIDTH_CANDIDATES:
        if n % cand == 0 and n // cand >= sub:
            width = cand
            break
    if width is None:
        for cand in _WIDTH_CANDIDATES:
            if n % cand == 0:
                width = cand
                break
    if width is None:
        # Ragged size (not a multiple of 128): a pad + slice path would add 1-2 full
        # extra HBM round trips, so return the input directly (exact identity).
        # TODO(synk): copy the sub-128-element tail in a tiny second block if an
        # explicitly materialized copy is ever required.
        return x

    rows = n // width
    orig_shape = x.shape
    x2d = x.reshape(rows, width)

    # Block rows: ~2 MiB per block, sublane-aligned. If the whole array fits in one
    # block, split it in two so v7x's second TensorCore participates.
    target_rows = max(sub, (_TARGET_BLOCK_BYTES // (width * itemsize)) // sub * sub)
    if rows > target_rows:
        tile_rows = target_rows
    else:
        half = _round_up(-(-rows // 2), sub)
        tile_rows = half if half < rows else rows  # fall back to full-dim block

    grid = (pl.cdiv(rows, tile_rows),)  # partial last block is masked by Pallas

    out = pl.pallas_call(
        _identity_kernel,
        out_shape=jax.ShapeDtypeStruct((rows, width), x.dtype),
        grid=grid,
        in_specs=[pl.BlockSpec((tile_rows, width), lambda i: (i, 0))],
        out_specs=pl.BlockSpec((tile_rows, width), lambda i: (i, 0)),
        input_output_aliases={0: 0},  # write back into the (donated) input buffer
        compiler_params=pltpu.CompilerParams(
            dimension_semantics=("parallel",)),  # megacore sharding on v7x
        cost_estimate=pl.CostEstimate(
            flops=0, transcendentals=0, bytes_accessed=2 * n * itemsize),
    )(x2d)

    return out.reshape(orig_shape)


def identity_module_forward(*args):
    """Mirrors IdentityModule.forward: return the first arg (via kernel) or None."""
    if len(args) > 0:
        return identity_pallas(args[0])
    return None


if __name__ == "__main__":
    key = jax.random.PRNGKey(0)
    shape = (2, 4, 16, 16)
    x = jax.random.normal(key, shape, jnp.float32)
    x_ref = jax.random.normal(key, shape, jnp.float32)  # identical reference copy

    # Donating the argument lets the aliased pallas output reuse the input's HBM
    # buffer — the whole identity becomes (at most) one in-place copy.
    fwd = jax.jit(lambda t: identity_module_forward(t), donate_argnums=(0,))
    y = fwd(x)
    jax.block_until_ready(y)

    assert y.shape == x_ref.shape
    assert y.dtype == x_ref.dtype
    assert bool(jnp.array_equal(y, x_ref))

    # Multi-arg path: forward(*args) returns only the first argument.
    x2 = jax.random.normal(key, shape, jnp.float32)
    extra = jax.random.normal(jax.random.PRNGKey(1), (3, 5), jnp.float32)
    y2 = identity_module_forward(x2, extra)
    jax.block_until_ready(y2)
    assert bool(jnp.array_equal(y2, x_ref))

    # Zero-arg path returns None (handled in the wrapper, not a kernel).
    assert identity_module_forward() is None

    print("KERNEL_OK")
</pallas_src>

<mosaic_0001>
module attributes {stable_mosaic.version = 11 : i64} {
  func.func @_identity_kernel(%arg0: i32, %arg1: memref<8x256xf32, #tpu.memory_space<vmem>>, %arg2: memref<8x256xf32, #tpu.memory_space<vmem>>) attributes {dimension_semantics = [#tpu.dimension_semantics<parallel>], iteration_bounds = array<i64: 1>, scalar_prefetch = 0 : i64, scratch_operands = 0 : i64, tpu.core_type = #tpu.core_type<tc>, window_params = [{transform_indices = @transform_0, window_bounds = array<i64: 8, 256>}, {transform_indices = @transform_1, window_bounds = array<i64: 8, 256>}]} {
    %c0 = arith.constant 0 : index
    %c0_0 = arith.constant 0 : index
    %0 = vector.load %arg1[%c0, %c0_0] : memref<8x256xf32, #tpu.memory_space<vmem>>, vector<8x256xf32>
    %c0_1 = arith.constant 0 : index
    %c0_2 = arith.constant 0 : index
    %1 = vector.load %arg2[%c0_1, %c0_2] : memref<8x256xf32, #tpu.memory_space<vmem>>, vector<8x256xf32>
    tpu.vector_store %arg2[%c0_1, %c0_2], %0 {strides = array<i32>} : memref<8x256xf32, #tpu.memory_space<vmem>>, vector<8x256xf32>,
    return
  }
  func.func @transform_0(%arg0: i32) -> (i32, i32) {
    %c0_i32 = arith.constant 0 : i32
    %c0_i32_0 = arith.constant 0 : i32
    return %arg0, %c0_i32 : i32, i32
  }
  func.func @transform_1(%arg0: i32) -> (i32, i32) {
    %c0_i32 = arith.constant 0 : i32
    %c0_i32_0 = arith.constant 0 : i32
    return %arg0, %c0_i32 : i32, i32
  }
}

</mosaic_0001>

<bundles_post_ra>
// kernel: _lambda_.1
= control target key start
LH: loop header
LB: loop body
LE: loop exit
PB: predicated region body
PF: predicated region fallthrough
CT: control target
= control target key end

     0   :  { %s38_s0 = inlined_call_operand.vmem [shape: f32[8,256], index: 0, kind: input, shape index: {}, may-alias: {0,1}]   ;;  %s39_s1 = inlined_call_operand.vmem [shape: f32[8,256], index: 1, kind: output, shape index: {}, may-alias: {0,1}]  }
   0x1   :  { %v8_v0 = vld [vmem:[%s38_s0] sm:$0xff]  ;;  %v9_v1 = vld [vmem:[%s38_s0 + $0x8] sm:$0xff] }
   0x2   :  { %10 = vst [vmem:[%s39_s1] sm:$0xff] %v8_v0  ;;  %11 = vst [vmem:[%s39_s1 + $0x8] sm:$0xff] %v9_v1 }

</bundles_post_ra>
